<compile_context>
chip_gen: v7x
topology: tpu7x:2x2x1
jax: 0.10.0
libtpu: 0.0.40
codegen_flags: <defaults>
</compile_context>

<pallas_src>
import functools
import math

import jax
import jax.numpy as jnp
from jax.experimental import pallas as pl
from jax.experimental.pallas import tpu as pltpu


# ---------------------------------------------------------------------------
# Pallas kernel
# ---------------------------------------------------------------------------

def _wan_rmsnorm_kernel(x_ref, w_ref, o_ref, *, eps):
    # x_ref: [tm, C] row tile; w_ref: [1, C] broadcast weight; o_ref: [tm, C].
    x = x_ref[...].astype(jnp.float32)                 # spec does x.float()
    ms = jnp.mean(x * x, axis=-1, keepdims=True)       # mean over channel dim
    y = x * jax.lax.rsqrt(ms + eps)                    # rsqrt -> EUP slot
    o_ref[...] = (y * w_ref[...]).astype(o_ref.dtype)  # fused weight, cast back


# ---------------------------------------------------------------------------
# Tiling heuristics (generation-aware)
# ---------------------------------------------------------------------------

def _vmem_capacity_bytes():
    """Physical per-core VMEM; conservative (v7x-sized) fallback if unknown."""
    try:
        info = pltpu.get_tpu_info()
        cap = int(getattr(info, "vmem_capacity_bytes"))
        if cap > 0:
            return cap
    except Exception:
        pass
    return 64 << 20


def _sublane_multiple(dtype):
    """Packed-sublane multiple: 8 for f32, 16 for bf16, 32 for int8/fp8."""
    itemsize = jnp.dtype(dtype).itemsize
    return max(8, 32 // max(itemsize, 1))


def _gen_params():
    """(target x-tile bytes, VMEM budget bytes, vmem_limit cap bytes)."""
    cap = _vmem_capacity_bytes()
    if cap >= (96 << 20):            # v5e / v6e class: 128 MiB VMEM
        return (8 << 20), (48 << 20), (48 << 20)
    else:                            # v7x class: 64 MiB VMEM
        return (6 << 20), (26 << 20), (26 << 20)


def _pick_row_tile(M, C, dtype):
    """Pick a row-tile that hits the HBM roofline without overflowing VMEM."""
    itemsize = jnp.dtype(dtype).itemsize
    mult = _sublane_multiple(dtype)
    target_tile_bytes, vmem_budget, _ = _gen_params()

    # Per-row VMEM footprint: double-buffered input + output tiles in x.dtype
    # plus ~2 f32 intermediates (upcast tile + mean(x^2) chain).
    per_row_bytes = C * (4 * itemsize + 2 * 4)
    margin = 2 << 20
    rows_vmem = max(mult, (vmem_budget - margin) // max(per_row_bytes, 1))
    rows_target = max(mult, target_tile_bytes // max(C * itemsize, 1))
    rows = min(rows_vmem, rows_target)
    rows = max(mult, (rows // mult) * mult)

    # Keep >= 4 grid blocks when M is large: both v7x TCs get work and the
    # double-buffered pipeline has iterations to overlap.
    if M > 2048:
        quarter = max(mult, (((M + 3) // 4) // mult) * mult)
        rows = min(rows, quarter)

    if M <= rows:
        return M                     # small input: one full-extent block
    return rows


# ---------------------------------------------------------------------------
# Wrapper
# ---------------------------------------------------------------------------

def wan_rmsnorm(x, weight, *, eps=1e-5, row_tile=None):
    """WanRMSNorm forward.  x: [..., C] (e.g. [B, L, C]); weight: [C]."""
    orig_shape = x.shape
    C = orig_shape[-1]
    M = math.prod(orig_shape[:-1]) if len(orig_shape) > 1 else 1
    x2d = x.reshape(M, C)
    w2d = weight.reshape(1, C)

    tm = row_tile if row_tile is not None else _pick_row_tile(M, C, x2d.dtype)
    grid = (pl.cdiv(M, tm),)

    # VMEM budget: double-buffered in + out tiles (x dtype), f32 intermediates
    # from the upcast / mean(x^2), resident weight, small margin. Clamp to a
    # generation-aware cap (~48 MiB on 128 MiB chips, ~26 MiB on v7x).
    _, _, vmem_cap = _gen_params()
    itemsize = x2d.dtype.itemsize
    tile_in_bytes = tm * C * itemsize
    tile_f32_bytes = tm * C * 4
    w_bytes = C * w2d.dtype.itemsize
    vmem_limit = (2 * tile_in_bytes + 2 * tile_in_bytes
                  + 2 * tile_f32_bytes + 2 * w_bytes + (2 << 20))
    vmem_limit = int(min(max(vmem_limit, 16 << 20), vmem_cap))

    out = pl.pallas_call(
        functools.partial(_wan_rmsnorm_kernel, eps=eps),
        out_shape=jax.ShapeDtypeStruct((M, C), x2d.dtype),
        grid_spec=pltpu.PrefetchScalarGridSpec(
            num_scalar_prefetch=0,
            grid=grid,
            in_specs=[
                pl.BlockSpec((tm, C), lambda i: (i, 0)),   # x rows (lane-dense C)
                pl.BlockSpec((1, C), lambda i: (0, 0)),    # weight (resident)
            ],
            out_specs=pl.BlockSpec((tm, C), lambda i: (i, 0)),
        ),
        compiler_params=pltpu.CompilerParams(
            dimension_semantics=("parallel",),             # megacore-friendly
            vmem_limit_bytes=vmem_limit,
        ),
    )(x2d, w2d)
    return out.reshape(orig_shape)


# ---------------------------------------------------------------------------
# Pure-JAX reference (correctness check only)
# ---------------------------------------------------------------------------

def wan_rmsnorm_ref(x, weight, *, eps=1e-5):
    y = x.astype(jnp.float32)
    ms = jnp.mean(y * y, axis=-1, keepdims=True)
    return (y * jax.lax.rsqrt(ms + eps) * weight).astype(x.dtype)


if __name__ == "__main__":
    key = jax.random.PRNGKey(0)
    kx, kw, kx2, kx3 = jax.random.split(key, 4)
    eps = 1e-5

    # Primary test: [B, L, C] = [2, 16, 128] (lane-dense channel dim), f32.
    B, L, C = 2, 16, 128
    x = jax.random.normal(kx, (B, L, C), dtype=jnp.float32)
    w = 1.0 + 0.1 * jax.random.normal(kw, (C,), dtype=jnp.float32)

    out = jax.block_until_ready(wan_rmsnorm(x, w, eps=eps))
    ref = wan_rmsnorm_ref(x, w, eps=eps)
    assert out.shape == x.shape and out.dtype == x.dtype
    err = float(jnp.max(jnp.abs(out - ref)))
    assert jnp.allclose(out, ref, atol=1e-5, rtol=1e-5), f"max abs err {err}"

    # Secondary test: row count not a multiple of the tile (exercises the
    # masked boundary block) and bf16 input (f32 compute, bf16 output).
    B2, L2, C2 = 5, 8, 128                     # M = 40 rows, tile 16 -> 3 blocks
    x2 = jax.random.normal(kx2, (B2, L2, C2), dtype=jnp.bfloat16)
    out2 = jax.block_until_ready(wan_rmsnorm(x2, w, eps=eps, row_tile=16))
    ref2 = wan_rmsnorm_ref(x2, w, eps=eps)
    assert out2.dtype == jnp.bfloat16
    assert jnp.allclose(out2.astype(jnp.float32), ref2.astype(jnp.float32),
                        atol=2e-2, rtol=2e-2)

    # Tertiary test: exercise the auto-tiler on a multi-block grid
    # (M = 4096 rows > 2048 -> grid of >= 4 blocks on every generation).
    B3, L3, C3 = 8, 512, 128
    x3 = jax.random.normal(kx3, (B3, L3, C3), dtype=jnp.float32)
    out3 = jax.block_until_ready(wan_rmsnorm(x3, w, eps=eps))
    ref3 = wan_rmsnorm_ref(x3, w, eps=eps)
    assert jnp.allclose(out3, ref3, atol=1e-5, rtol=1e-5)

    print("KERNEL_OK")
</pallas_src>

<mosaic_0001>
module attributes {stable_mosaic.version = 11 : i64} {
  func.func @_wan_rmsnorm_kernel(%arg0: i32, %arg1: memref<32x128xf32, #tpu.memory_space<vmem>>, %arg2: memref<1x128xf32, #tpu.memory_space<vmem>>, %arg3: memref<32x128xf32, #tpu.memory_space<vmem>>) attributes {dimension_semantics = [#tpu.dimension_semantics<parallel>], iteration_bounds = array<i64: 1>, scalar_prefetch = 0 : i64, scratch_operands = 0 : i64, tpu.core_type = #tpu.core_type<tc>, window_params = [{transform_indices = @transform_0, window_bounds = array<i64: 32, 128>}, {pipeline_mode = #tpu.pipeline_mode<synchronous>, transform_indices = @transform_1, window_bounds = array<i64: 1, 128>}, {transform_indices = @transform_2, window_bounds = array<i64: 32, 128>}]} {
    %c0 = arith.constant 0 : index
    %c0_0 = arith.constant 0 : index
    %0 = vector.load %arg1[%c0, %c0_0] : memref<32x128xf32, #tpu.memory_space<vmem>>, vector<32x128xf32>
    %1 = arith.mulf %0, %0 : vector<32x128xf32>
    %cst = arith.constant dense<0.000000e+00> : vector<32xf32>
    %2 = vector.multi_reduction <add>, %1, %cst [1] : vector<32x128xf32> to vector<32xf32>
    %3 = vector.shape_cast %2 : vector<32xf32> to vector<32x1xf32>
    %cst_1 = arith.constant 1.280000e+02 : f32
    %4 = vector.broadcast %cst_1 : f32 to vector<32x1xf32>
    %5 = arith.divf %3, %4 : vector<32x1xf32>
    %cst_2 = arith.constant 9.99999974E-6 : f32
    %6 = vector.broadcast %cst_2 : f32 to vector<32x1xf32>
    %7 = arith.addf %5, %6 : vector<32x1xf32>
    %8 = math.rsqrt %7 : vector<32x1xf32>
    %9 = vector.broadcast %8 : vector<32x1xf32> to vector<32x128xf32>
    %10 = arith.mulf %0, %9 : vector<32x128xf32>
    %c0_3 = arith.constant 0 : index
    %c0_4 = arith.constant 0 : index
    %11 = vector.load %arg2[%c0_3, %c0_4] : memref<1x128xf32, #tpu.memory_space<vmem>>, vector<1x128xf32>
    %12 = vector.broadcast %11 : vector<1x128xf32> to vector<32x128xf32>
    %13 = arith.mulf %10, %12 : vector<32x128xf32>
    %c0_5 = arith.constant 0 : index
    %c0_6 = arith.constant 0 : index
    %14 = vector.load %arg3[%c0_5, %c0_6] : memref<32x128xf32, #tpu.memory_space<vmem>>, vector<32x128xf32>
    tpu.vector_store %arg3[%c0_5, %c0_6], %13 {strides = array<i32>} : memref<32x128xf32, #tpu.memory_space<vmem>>, vector<32x128xf32>,
    return
  }
  func.func @transform_0(%arg0: i32) -> (i32, i32) {
    %c0_i32 = arith.constant 0 : i32
    %c0_i32_0 = arith.constant 0 : i32
    return %arg0, %c0_i32 : i32, i32
  }
  func.func @transform_1(%arg0: i32) -> (i32, i32) {
    %c0_i32 = arith.constant 0 : i32
    %c0_i32_0 = arith.constant 0 : i32
    %c0_i32_1 = arith.constant 0 : i32
    return %c0_i32, %c0_i32_0 : i32, i32
  }
  func.func @transform_2(%arg0: i32) -> (i32, i32) {
    %c0_i32 = arith.constant 0 : i32
    %c0_i32_0 = arith.constant 0 : i32
    return %arg0, %c0_i32 : i32, i32
  }
}

</mosaic_0001>

<bundles_post_ra>
// kernel: tpu_custom_call.1
= control target key start
LH: loop header
LB: loop body
LE: loop exit
PB: predicated region body
PF: predicated region fallthrough
CT: control target
= control target key end

     0   :  { %7 = vsyncpa [#allocation3], 0  ;;  %s204_s0 = inlined_call_operand.hbm [shape: f32[32,128], index: 0, kind: input, shape index: {}]   ;;  %s205_s1 = inlined_call_operand.vmem [shape: f32[1,128], index: 1, kind: input, shape index: {}]   ;;  %s206_s2 = inlined_call_operand.hbm [shape: f32[32,128], index: 2, kind: output, shape index: {}]  }
   0x1   :  { %8 = vsyncpa [#allocation4], 0  ;;  %s152_s9 = smov [#allocation2]   ;;  %s104_s13 = scalar_lea.hbm %s204_s0, 512 }
   0x2   :  { %s14_s10 = sshll.u32 %s152_s9, 4  ;;  %p105_p0 = scmp.ne.s32.totalorder %s204_s0, %s104_s13  ;;  %s15_s10 = int_to_ptr.vmem [resolvable:$true] %s14_s10 }
   0x3   :  { %p108_p1 = scmp.lt.u32.totalorder %s104_s13, %s204_s0 }
   0x5   :  { %p110_p2 = pnand %p108_p1, %p105_p0 }
   0x7   :  { %113 = shalt.err (!%p110_p2)
}
   0x8   :  { %s114_s18 = scalar_lea.vmem %s15_s10, 512  ;;  %p119_p4 = scmp.lt.s32.totalorder %s15_s10, %s15_s10 }
   0x9   :  { %p115_p3 = scmp.ne.s32.totalorder %s15_s10, %s114_s18  ;;  %p120_p5 = scmp.lt.s32.totalorder %s114_s18, %s114_s18 }
   0xb   :  { %p121_p6 = por %p120_p5, %p119_p4 }
   0xd   :  { %p122_p7 = pnand %p121_p6, %p115_p3 }
   0xf   :  { %125 = shalt.err (!%p122_p7)
}
  0x10   :  { %s153_s19 = smov 128   ;;  %s154_s20 = smov 8  }
  0x11   :  { %20 = dma.hbm_to_vmem [thread:$0]  %s204_s0, 512, %s15_s10, [#allocation3], %s153_s19, %s153_s19, %s154_s20  }
  0x12   :  { %148 = dma.done.wait [#allocation3], 512  }
  0x13   :  { %149 = vsyncadd [#allocation3], 4294966784  ;;  %v28_v0 = vld [vmem:[#allocation2 + $0x10] sm:$0xff]  ;;  %v26_v1 = vld [vmem:[#allocation2] sm:$0xff]  ;;  %s155_s24 = smov [#allocation5]  }
  0x14   :  { %v29_v2 = vld [vmem:[#allocation2 + $0x18] sm:$0xff]  ;;  %v32_v3 = vmul.f32 %v28_v0, %v28_v0  ;;  %v30_v4 = vmul.f32 %v26_v1, %v26_v1  ;;  %v27_v5 = vld [vmem:[#allocation2 + $0x8] sm:$0xff]  ;;  %v91_v21 = vld [vmem:[%s205_s1] ss:$0 sm:$0xff]  ;;  %s79_s25 = sshll.u32 %s155_s24, 4  ;;  %s80_s25 = int_to_ptr.vmem [resolvable:$true] %s79_s25 }
  0x15   :  { %v33_v6 = vmul.f32 %v29_v2, %v29_v2  ;;  %v31_v7 = vmul.f32 %v27_v5, %v27_v5  ;;  %s126_s26 = scalar_lea.vmem %s80_s25, 512  ;;  %p131_p9 = scmp.lt.s32.totalorder %s80_s25, %s80_s25 }
  0x16   :  { %38 = vadd.xlane.f32.xlu1 %v32_v3  ;;  %34 = vadd.xlane.f32.xlu0 %v30_v4  ;;  %p127_p8 = scmp.ne.s32.totalorder %s80_s25, %s126_s26  ;;  %p132_p10 = scmp.lt.s32.totalorder %s126_s26, %s126_s26 }
  0x18   :  { %p133_p11 = por %p132_p10, %p131_p9 }
  0x1a   :  { %40 = vadd.xlane.f32.xlu1 %v33_v6  ;;  %36 = vadd.xlane.f32.xlu0 %v31_v7  ;;  %p134_p12 = pnand %p133_p11, %p127_p8 }
  0xa3   :  { %v39_v8 = vpop.xlane.xlu1 %38  ;;  %v35_v9 = vpop.xlane.xlu0 %34 }
  0xa4   :  { %v45_v10 = vmul.f32 0.0078125, %v39_v8  ;;  %v43_v11 = vmul.f32 0.0078125, %v35_v9 }
  0xa6   :  { %v49_v12 = vadd.f32 1e-05, %v45_v10  ;;  %v47_v13 = vadd.f32 1e-05, %v43_v11 }
  0xa7   :  { %v41_v14 = vpop.xlane.xlu1 %40  ;;  %v37_v15 = vpop.xlane.xlu0 %36 }
  0xa8   :  { %96 = vrsqrt.f32 %v49_v12  ;;  %v46_v16 = vmul.f32 0.0078125, %v41_v14  ;;  %v44_v17 = vmul.f32 0.0078125, %v37_v15 }
  0xa9   :  { %98 = vrsqrt.f32 %v47_v13 }
  0xaa   :  { %v50_v18 = vadd.f32 1e-05, %v46_v16  ;;  %v48_v19 = vadd.f32 1e-05, %v44_v17 }
  0xac   :  { %100 = vrsqrt.f32 %v50_v18 }
  0xad   :  { %102 = vrsqrt.f32 %v48_v19 }
  0xb2   :  { %v97_v20 = vpop.eup %96 }
  0xb3   :  { %v99_v22 = vpop.eup %98  ;;  %v57_v23 = vmul.f32 %v97_v20, %v28_v0 }
  0xb4   :  { %v55_v24 = vmul.f32 %v99_v22, %v26_v1 }
  0xb5   :  { %v68_v25 = vmul.f32 %v91_v21, %v57_v23 }
  0xb6   :  { %v101_v26 = vpop.eup %100  ;;  %v66_v27 = vmul.f32 %v91_v21, %v55_v24 }
  0xb7   :  { %v103_v28 = vpop.eup %102  ;;  %v58_v29 = vmul.f32 %v101_v26, %v29_v2  ;;  %72 = vst [vmem:[#allocation5 + $0x10] sm:$0xff] %v68_v25 }
  0xb8   :  { %v56_v30 = vmul.f32 %v103_v28, %v27_v5  ;;  %70 = vst [vmem:[#allocation5] sm:$0xff] %v66_v27 }
  0xb9   :  { %v69_v31 = vmul.f32 %v91_v21, %v58_v29 }
  0xba   :  { %v67_v32 = vmul.f32 %v91_v21, %v56_v30 }
  0xbb   :  { %73 = vst [vmem:[#allocation5 + $0x18] sm:$0xff] %v69_v31 }
  0xbc   :  { %71 = vst [vmem:[#allocation5 + $0x8] sm:$0xff] %v67_v32 }
  0xbd   :  { %137 = shalt.err (!%p134_p12)
}
  0xbe   :  { %s138_s28 = scalar_lea.hbm %s206_s2, 512 }
  0xbf   :  { %p139_p13 = scmp.ne.s32.totalorder %s206_s2, %s138_s28  ;;  %p142_p0 = scmp.lt.u32.totalorder %s138_s28, %s206_s2 }
  0xc1   :  { %p144_p1 = pnand %p142_p0, %p139_p13 }
  0xc3   :  { %147 = shalt.err (!%p144_p1)
}
  0xc4   :  { %85 = dma.vmem_to_hbm [thread:$0]  %s80_s25, 512, %s206_s2, [#allocation4], %s153_s19, %s153_s19, %s154_s20  }
  0xc5   :  { %150 = dma.done.wait [#allocation4], 512  }
  0xc6   :  { %151 = vsyncadd [#allocation4], 4294966784 }
  0xc7   :  { %89 = vsyncpa [#allocation3], 1 }
  0xc8   :  { %90 = vsyncpa [#allocation4], 1 }

</bundles_post_ra>
